<compile_context>
chip_gen: v7x
topology: tpu7x:2x2x1
jax: 0.10.0
libtpu: 0.0.40
codegen_flags: <defaults>
</compile_context>

<pallas_src>
import functools

import numpy as np

import jax
import jax.numpy as jnp
from jax import lax
from jax.experimental import pallas as pl
from jax.experimental.pallas import tpu as pltpu


# ---------------------------------------------------------------------------
# Host-side helpers.
# ---------------------------------------------------------------------------
def _round_up(x: int, m: int) -> int:
    return ((x + m - 1) // m) * m


def _vmem_capacity_bytes() -> int:
    """Physical per-core VMEM; conservative 64 MiB default if unknown."""
    try:
        info = pltpu.get_tpu_info()
        cap = int(getattr(info, "vmem_capacity_bytes", 0) or 0)
        if cap > 0:
            return cap
    except Exception:
        pass
    return 64 << 20


def _bilinear_weight_matrix_np(in_size: int, out_size: int) -> np.ndarray:
    """(out_size, in_size) bilinear weights, align_corners=False, no antialias."""
    scale = in_size / out_size
    dst = np.arange(out_size, dtype=np.float64)
    src = (dst + 0.5) * scale - 0.5
    src = np.maximum(src, 0.0)                        # PyTorch clamps src >= 0
    i0 = np.minimum(np.floor(src).astype(np.int64), in_size - 1)
    i1 = np.minimum(i0 + 1, in_size - 1)
    w1 = (src - i0).astype(np.float32)
    w0 = (1.0 - w1).astype(np.float32)
    rows = np.arange(out_size)
    w = np.zeros((out_size, in_size), np.float32)
    w[rows, i0] += w0
    w[rows, i1] += w1
    return w


def _nearest_weight_matrix_np(in_size: int, out_size: int) -> np.ndarray:
    """(out_size, in_size) one-hot rows reproducing PyTorch legacy 'nearest'."""
    scale = in_size / out_size
    src = np.minimum(np.floor(np.arange(out_size) * scale).astype(np.int64),
                     in_size - 1)
    w = np.zeros((out_size, in_size), np.float32)
    w[np.arange(out_size), src] = 1.0
    return w


def _compute_output_size(in_hw, size, max_size=None):
    """Replicates torchvision F.resize output-size logic."""
    h, w = in_hw
    if isinstance(size, int):
        short, long = (w, h) if w <= h else (h, w)
        new_short, new_long = size, int(size * long / short)
        if max_size is not None and new_long > max_size:
            new_short = int(max_size * new_short / new_long)
            new_long = max_size
        new_w, new_h = (new_short, new_long) if w <= h else (new_long, new_short)
        return new_h, new_w
    if len(size) == 1:
        return _compute_output_size(in_hw, size[0], max_size)
    return int(size[0]), int(size[1])


# ---------------------------------------------------------------------------
# Pallas kernel: TB planes per grid step, TH output rows per step.
#   t[b]   = Wh_tile @ x[b]           (per plane, written to a shared scratch)
#   out    = t_all @ WwT              (one fused big-M matmul for all planes)
# ---------------------------------------------------------------------------
def _resize_kernel(wh_ref, wwt_ref, x_ref, o_ref, t_ref, *,
                   compute_dtype, out_is_int):
    # wh_ref : (TH, Hin)        row-interpolation weights (compute dtype)
    # wwt_ref: (Win, Woutp)     column weights, transposed, lane-padded to %128
    # x_ref  : (TB, Hin, Win)   plane batch, native input dtype
    # o_ref  : (TB, TH, Woutp)  output block
    # t_ref  : (TB*TH, Win)     f32 scratch holding the row-resized planes
    tb, th, woutp = o_ref.shape
    wh = wh_ref[...].astype(compute_dtype)

    def row_pass(b, carry):
        xb = x_ref[b].astype(compute_dtype)                       # (Hin, Win)
        start = pl.multiple_of(b * th, 8)
        t_ref[pl.ds(start, th), :] = jnp.dot(
            wh, xb, preferred_element_type=jnp.float32)           # (TH, Win)
        return carry

    lax.fori_loop(0, tb, row_pass, 0, unroll=(tb <= 8))

    # Single fused (TB*TH, Win) @ (Win, Woutp) MXU pass instead of TB small
    # matmuls sharing the same RHS (amortizes weight pushes / fill & drain).
    big = jnp.dot(t_ref[...].astype(compute_dtype),
                  wwt_ref[...].astype(compute_dtype),
                  preferred_element_type=jnp.float32)             # (TB*TH, Woutp)

    if out_is_int:
        # Exact for one-hot (nearest) weights with |values| < 2^24.
        # TODO(synk): gather-based nearest path for very large integer values.
        big = jnp.round(big)
        info = jnp.iinfo(o_ref.dtype)
        if info.bits <= 16:                       # clamp narrow ints (e.g. uint8)
            big = jnp.clip(big, float(info.min), float(info.max))

    o_ref[...] = big.astype(o_ref.dtype).reshape(tb, th, woutp)


def _resize_plane_stack(x_flat, wh_np, wwt_np, out_dtype, compute_dtype):
    """x_flat: (NC, Hin, Win) -> (NC, Houtp, Woutp) out_dtype (caller crops)."""
    nc, hin, win = x_flat.shape
    hout = wh_np.shape[0]
    woutp = wwt_np.shape[1]
    in_b = jnp.dtype(x_flat.dtype).itemsize
    out_b = jnp.dtype(out_dtype).itemsize
    w_b = jnp.dtype(compute_dtype).itemsize

    # ---- generation-aware VMEM sizing.
    vmem_cap = _vmem_capacity_bytes()
    if vmem_cap <= (80 << 20):          # v7x-class: 64 MiB physical per core
        budget = (vmem_cap * 2) // 5    # ~25.6 MiB working set target
    else:                               # v5e / v6e: 128 MiB physical
        budget = vmem_cap // 2          # ~64 MiB working set target
    vmem_hard_cap = (vmem_cap * 27) // 32   # ~84% of physical (compiler scratch headroom)

    sub = max(8, 32 // out_b)           # sublane tile of the output dtype

    def cost(tb, th):
        x_blk = 2 * tb * hin * win * in_b          # input block (double-buffered)
        o_blk = 2 * tb * th * woutp * out_b        # output block (double-buffered)
        wh_blk = 2 * th * hin * w_b                # row weights (vary over h axis)
        wwt_blk = 1 * win * woutp * w_b            # column weights (single-buffered)
        t_scr = tb * th * win * 4                  # f32 scratch
        temps = (hin * win + th * win + tb * th * woutp) * 4   # in-flight temporaries
        return x_blk + o_blk + wh_blk + wwt_blk + t_scr + temps

    # ---- output-row tile TH: multiple of the output sublane tile; Hout is
    # padded to a multiple of TH so candidates always exist (no full-Hout
    # fallback that can exceed VMEM).
    th_full = _round_up(hout, sub)
    th = th_full
    if cost(1, th_full) > budget:
        th = sub
        for cand in range(th_full - sub, sub - 1, -sub):
            if cost(1, cand) <= budget:
                th = cand
                break
        # TODO(synk): planes too large even at th == sub would additionally
        # need Hin/Win tiling; not required for typical image sizes.
    houtp = _round_up(hout, th)
    nh = houtp // th

    # ---- plane-batch tile TB: largest divisor of NC that fits the budget.
    max_tb = 32
    tb = 1
    for d in range(1, min(nc, max_tb) + 1):
        if nc % d == 0 and cost(d, th) <= budget:
            tb = d

    vmem_limit = int(min(max(cost(tb, th) + (16 << 20), 32 << 20), vmem_hard_cap))

    # Pad Wh rows to Houtp (zero rows -> zero output rows, cropped by caller)
    # and store both weight matrices in the compute dtype so they are held and
    # DMA'd at native width (in-kernel astype becomes a no-op).
    wh_pad = np.zeros((houtp, hin), np.float32)
    wh_pad[:hout] = wh_np
    wh = jnp.asarray(wh_pad, dtype=compute_dtype)
    wwt = jnp.asarray(wwt_np, dtype=compute_dtype)

    out_is_int = bool(jnp.issubdtype(jnp.dtype(out_dtype), jnp.integer))
    kernel = functools.partial(_resize_kernel, compute_dtype=compute_dtype,
                               out_is_int=out_is_int)

    def build(single_buffer_weights):
        # WwT has a constant block index -> single-buffer it; same for Wh when
        # there is only one Hout tile.
        wconst = (dict(pipeline_mode=pl.Buffered(1))
                  if single_buffer_weights else {})
        whkw = wconst if (single_buffer_weights and nh == 1) else {}
        return pl.pallas_call(
            kernel,
            out_shape=jax.ShapeDtypeStruct((nc, houtp, woutp), out_dtype),
            grid=(nc // tb, nh),
            in_specs=[
                pl.BlockSpec((th, hin), lambda p, h: (h, 0), **whkw),      # Wh tile
                pl.BlockSpec((win, woutp), lambda p, h: (0, 0), **wconst),  # WwT
                pl.BlockSpec((tb, hin, win), lambda p, h: (p, 0, 0)),       # planes
            ],
            out_specs=pl.BlockSpec((tb, th, woutp), lambda p, h: (p, h, 0)),
            scratch_shapes=[pltpu.VMEM((tb * th, win), jnp.float32)],
            compiler_params=pltpu.CompilerParams(
                # No accumulation across either axis -> both shardable (v7x 2 TCs).
                dimension_semantics=("parallel", "parallel"),
                vmem_limit_bytes=vmem_limit,
            ),
        )

    try:
        return build(True)(wh, wwt, x_flat)
    except Exception:
        # pipeline_mode=pl.Buffered(1) unsupported on this jax/Mosaic version;
        # fall back to default double-buffering (still correct).
        return build(False)(wh, wwt, x_flat)


def pallas_resize(x, size, interpolation="bilinear", max_size=None,
                  compute_dtype=None):
    """Resize a [..., H, W] tensor.  interpolation in {'bilinear', 'nearest'}.

    compute_dtype=None auto-selects: bf16 for sub-32-bit image dtypes (MXU
    native on v6e/v7x, ~1e-3 relative error), f32 otherwise and always for
    the nearest/label path (bit-exact one-hot selection).
    """
    interpolation = getattr(interpolation, "value", interpolation)
    *lead, hin, win = x.shape
    hout, wout = _compute_output_size((hin, win), size, max_size)

    if interpolation in ("bilinear", "linear"):
        wh = _bilinear_weight_matrix_np(hin, hout)
        ww = _bilinear_weight_matrix_np(win, wout)
    elif interpolation == "nearest":
        wh = _nearest_weight_matrix_np(hin, hout)
        ww = _nearest_weight_matrix_np(win, wout)
    else:
        raise ValueError(f"unsupported interpolation: {interpolation}")

    if compute_dtype is None:
        xdt = jnp.dtype(x.dtype)
        if interpolation != "nearest" and xdt.itemsize <= 2:
            compute_dtype = jnp.bfloat16     # uint8 / f16 / bf16 image data
        else:
            compute_dtype = jnp.float32      # f32 parity / exact nearest

    # Pad the output lane dimension to a multiple of 128 -> unmasked stores.
    woutp = _round_up(wout, 128)
    wwt = np.zeros((win, woutp), np.float32)
    wwt[:, :wout] = ww.T

    x_flat = x.reshape((-1, hin, win))
    out = _resize_plane_stack(x_flat, wh, wwt, x.dtype, compute_dtype)

    # TODO(synk): this crop is a separate XLA slice over the whole output in
    # HBM; keep the padded layout if the downstream consumer can accept it.
    if out.shape[1] != hout or out.shape[2] != wout:
        out = out[:, :hout, :wout]
    return out.reshape(tuple(lead) + (hout, wout))


class ResizePallas:
    """Mirrors the PyTorch `Resize` transform forward(data) semantics."""

    # TODO(synk): torchvision's antialias=True path is not implemented (matches
    # the tensor default antialias=None -> no antialiasing).
    def __init__(self, size, interpolation="bilinear", max_size=None,
                 antialias=None, compute_dtype=None):
        self.size = size
        self.interpolation = interpolation
        self.max_size = max_size
        self.antialias = antialias
        self.compute_dtype = compute_dtype

    def __call__(self, data):
        img = data["img"]
        label = data.get("label", None)
        out = {"img": pallas_resize(img, self.size, self.interpolation,
                                    self.max_size, self.compute_dtype)}
        if label is not None:
            out["label"] = pallas_resize(label, self.size, "nearest",
                                         self.max_size)
        return out


if __name__ == "__main__":
    key = jax.random.PRNGKey(0)
    k_img, k_lbl, k_bf = jax.random.split(key, 3)

    # Small NCHW inputs consistent with the [..., H, W] convention.
    img = jax.random.normal(k_img, (2, 4, 16, 16), dtype=jnp.float32)
    label = jax.random.randint(k_lbl, (2, 1, 16, 16), 0, 21, dtype=jnp.int32)

    transform = ResizePallas(size=(8, 8), interpolation="bilinear")
    out = transform({"img": img, "label": label})
    out_img = jax.block_until_ready(out["img"])
    out_lbl = jax.block_until_ready(out["label"])

    assert out_img.shape == (2, 4, 8, 8) and out_img.dtype == jnp.float32
    assert out_lbl.shape == (2, 1, 8, 8) and out_lbl.dtype == jnp.int32

    # Reference check of the bilinear matmul path against plain-JAX einsum.
    wh = jnp.asarray(_bilinear_weight_matrix_np(16, 8))
    ww = jnp.asarray(_bilinear_weight_matrix_np(16, 8))
    ref = jnp.einsum("oh,nchw,pw->ncop", wh, img, ww)
    assert jnp.allclose(out_img, ref, atol=1e-5), "bilinear mismatch"

    # Reference check of the nearest path (gather-based).
    src = np.minimum(np.floor(np.arange(8) * 2.0).astype(np.int32), 15)
    ref_lbl = label[:, :, src, :][:, :, :, src]
    assert jnp.array_equal(out_lbl, ref_lbl), "nearest mismatch"

    # bf16 image exercises the auto-selected half-precision MXU compute path.
    img_bf = jax.random.normal(k_bf, (2, 4, 16, 16), dtype=jnp.bfloat16)
    out_bf = jax.block_until_ready(pallas_resize(img_bf, (8, 8), "bilinear"))
    assert out_bf.shape == (2, 4, 8, 8) and out_bf.dtype == jnp.bfloat16
    ref_bf = jnp.einsum("oh,nchw,pw->ncop", wh, img_bf.astype(jnp.float32), ww)
    assert jnp.allclose(out_bf.astype(jnp.float32), ref_bf, atol=0.1), "bf16 mismatch"

    print("KERNEL_OK")
</pallas_src>

<mosaic_0001>
module attributes {stable_mosaic.version = 11 : i64} {
  func.func @_resize_kernel(%arg0: i32, %arg1: i32, %arg2: memref<8x16xf32, #tpu.memory_space<vmem>>, %arg3: memref<16x128xf32, #tpu.memory_space<vmem>>, %arg4: memref<8x16x16xf32, #tpu.memory_space<vmem>>, %arg5: memref<8x8x128xf32, #tpu.memory_space<vmem>>, %arg6: memref<64x16xf32, #tpu.memory_space<vmem>>) attributes {dimension_semantics = [#tpu.dimension_semantics<parallel>, #tpu.dimension_semantics<parallel>], iteration_bounds = array<i64: 1, 1>, scalar_prefetch = 0 : i64, scratch_operands = 1 : i64, tpu.core_type = #tpu.core_type<tc>, window_params = [{pipeline_mode = #tpu.pipeline_mode<synchronous>, transform_indices = @transform_0, window_bounds = array<i64: 8, 16>}, {pipeline_mode = #tpu.pipeline_mode<synchronous>, transform_indices = @transform_1, window_bounds = array<i64: 16, 128>}, {transform_indices = @transform_2, window_bounds = array<i64: 8, 16, 16>}, {transform_indices = @transform_3, window_bounds = array<i64: 8, 8, 128>}]} {
    %c0 = arith.constant 0 : index
    %c0_0 = arith.constant 0 : index
    %0 = vector.load %arg2[%c0, %c0_0] : memref<8x16xf32, #tpu.memory_space<vmem>>, vector<8x16xf32>
    %c0_i32 = arith.constant 0 : i32
    %1 = arith.index_cast %c0_i32 : i32 to index
    %c0_1 = arith.constant 0 : index
    %c0_2 = arith.constant 0 : index
    %2 = vector.load %arg4[%1, %c0_1, %c0_2] : memref<8x16x16xf32, #tpu.memory_space<vmem>>, vector<1x16x16xf32>
    %3 = vector.shape_cast %2 : vector<1x16x16xf32> to vector<16x16xf32>
    %c8_i32 = arith.constant 8 : i32
    %4 = arith.muli %c0_i32, %c8_i32 : i32
    %5 = tpu.assume_multiple %4, 8 : i32
    %cst = arith.constant dense<0.000000e+00> : vector<8x16xf32>
    %6 = tpu.matmul %0, %3, %cst {dimension_numbers = #tpu.dot_dimension_numbers<[1], [0], [0], [1], [0, 0, 1, 1], [], []>} : vector<8x16xf32>, vector<16x16xf32>, vector<8x16xf32> -> vector<8x16xf32>
    %7 = arith.index_cast %5 : i32 to index
    %c0_3 = arith.constant 0 : index
    %8 = vector.load %arg6[%7, %c0_3] : memref<64x16xf32, #tpu.memory_space<vmem>>, vector<8x16xf32>
    tpu.vector_store %arg6[%7, %c0_3], %6 {strides = array<i32>} : memref<64x16xf32, #tpu.memory_space<vmem>>, vector<8x16xf32>,
    %c1_i32 = arith.constant 1 : i32
    %9 = arith.index_cast %c1_i32 : i32 to index
    %c0_4 = arith.constant 0 : index
    %c0_5 = arith.constant 0 : index
    %10 = vector.load %arg4[%9, %c0_4, %c0_5] : memref<8x16x16xf32, #tpu.memory_space<vmem>>, vector<1x16x16xf32>
    %11 = vector.shape_cast %10 : vector<1x16x16xf32> to vector<16x16xf32>
    %c8_i32_6 = arith.constant 8 : i32
    %12 = arith.muli %c1_i32, %c8_i32_6 : i32
    %13 = tpu.assume_multiple %12, 8 : i32
    %cst_7 = arith.constant dense<0.000000e+00> : vector<8x16xf32>
    %14 = tpu.matmul %0, %11, %cst_7 {dimension_numbers = #tpu.dot_dimension_numbers<[1], [0], [0], [1], [0, 0, 1, 1], [], []>} : vector<8x16xf32>, vector<16x16xf32>, vector<8x16xf32> -> vector<8x16xf32>
    %15 = arith.index_cast %13 : i32 to index
    %c0_8 = arith.constant 0 : index
    %16 = vector.load %arg6[%15, %c0_8] : memref<64x16xf32, #tpu.memory_space<vmem>>, vector<8x16xf32>
    tpu.vector_store %arg6[%15, %c0_8], %14 {strides = array<i32>} : memref<64x16xf32, #tpu.memory_space<vmem>>, vector<8x16xf32>,
    %c2_i32 = arith.constant 2 : i32
    %17 = arith.index_cast %c2_i32 : i32 to index
    %c0_9 = arith.constant 0 : index
    %c0_10 = arith.constant 0 : index
    %18 = vector.load %arg4[%17, %c0_9, %c0_10] : memref<8x16x16xf32, #tpu.memory_space<vmem>>, vector<1x16x16xf32>
    %19 = vector.shape_cast %18 : vector<1x16x16xf32> to vector<16x16xf32>
    %c8_i32_11 = arith.constant 8 : i32
    %20 = arith.muli %c2_i32, %c8_i32_11 : i32
    %21 = tpu.assume_multiple %20, 8 : i32
    %cst_12 = arith.constant dense<0.000000e+00> : vector<8x16xf32>
    %22 = tpu.matmul %0, %19, %cst_12 {dimension_numbers = #tpu.dot_dimension_numbers<[1], [0], [0], [1], [0, 0, 1, 1], [], []>} : vector<8x16xf32>, vector<16x16xf32>, vector<8x16xf32> -> vector<8x16xf32>
    %23 = arith.index_cast %21 : i32 to index
    %c0_13 = arith.constant 0 : index
    %24 = vector.load %arg6[%23, %c0_13] : memref<64x16xf32, #tpu.memory_space<vmem>>, vector<8x16xf32>
    tpu.vector_store %arg6[%23, %c0_13], %22 {strides = array<i32>} : memref<64x16xf32, #tpu.memory_space<vmem>>, vector<8x16xf32>,
    %c3_i32 = arith.constant 3 : i32
    %25 = arith.index_cast %c3_i32 : i32 to index
    %c0_14 = arith.constant 0 : index
    %c0_15 = arith.constant 0 : index
    %26 = vector.load %arg4[%25, %c0_14, %c0_15] : memref<8x16x16xf32, #tpu.memory_space<vmem>>, vector<1x16x16xf32>
    %27 = vector.shape_cast %26 : vector<1x16x16xf32> to vector<16x16xf32>
    %c8_i32_16 = arith.constant 8 : i32
    %28 = arith.muli %c3_i32, %c8_i32_16 : i32
    %29 = tpu.assume_multiple %28, 8 : i32
    %cst_17 = arith.constant dense<0.000000e+00> : vector<8x16xf32>
    %30 = tpu.matmul %0, %27, %cst_17 {dimension_numbers = #tpu.dot_dimension_numbers<[1], [0], [0], [1], [0, 0, 1, 1], [], []>} : vector<8x16xf32>, vector<16x16xf32>, vector<8x16xf32> -> vector<8x16xf32>
    %31 = arith.index_cast %29 : i32 to index
    %c0_18 = arith.constant 0 : index
    %32 = vector.load %arg6[%31, %c0_18] : memref<64x16xf32, #tpu.memory_space<vmem>>, vector<8x16xf32>
    tpu.vector_store %arg6[%31, %c0_18], %30 {strides = array<i32>} : memref<64x16xf32, #tpu.memory_space<vmem>>, vector<8x16xf32>,
    %c4_i32 = arith.constant 4 : i32
    %33 = arith.index_cast %c4_i32 : i32 to index
    %c0_19 = arith.constant 0 : index
    %c0_20 = arith.constant 0 : index
    %34 = vector.load %arg4[%33, %c0_19, %c0_20] : memref<8x16x16xf32, #tpu.memory_space<vmem>>, vector<1x16x16xf32>
    %35 = vector.shape_cast %34 : vector<1x16x16xf32> to vector<16x16xf32>
    %c8_i32_21 = arith.constant 8 : i32
    %36 = arith.muli %c4_i32, %c8_i32_21 : i32
    %37 = tpu.assume_multiple %36, 8 : i32
    %cst_22 = arith.constant dense<0.000000e+00> : vector<8x16xf32>
    %38 = tpu.matmul %0, %35, %cst_22 {dimension_numbers = #tpu.dot_dimension_numbers<[1], [0], [0], [1], [0, 0, 1, 1], [], []>} : vector<8x16xf32>, vector<16x16xf32>, vector<8x16xf32> -> vector<8x16xf32>
    %39 = arith.index_cast %37 : i32 to index
    %c0_23 = arith.constant 0 : index
    %40 = vector.load %arg6[%39, %c0_23] : memref<64x16xf32, #tpu.memory_space<vmem>>, vector<8x16xf32>
    tpu.vector_store %arg6[%39, %c0_23], %38 {strides = array<i32>} : memref<64x16xf32, #tpu.memory_space<vmem>>, vector<8x16xf32>,
    %c5_i32 = arith.constant 5 : i32
    %41 = arith.index_cast %c5_i32 : i32 to index
    %c0_24 = arith.constant 0 : index
    %c0_25 = arith.constant 0 : index
    %42 = vector.load %arg4[%41, %c0_24, %c0_25] : memref<8x16x16xf32, #tpu.memory_space<vmem>>, vector<1x16x16xf32>
    %43 = vector.shape_cast %42 : vector<1x16x16xf32> to vector<16x16xf32>
    %c8_i32_26 = arith.constant 8 : i32
    %44 = arith.muli %c5_i32, %c8_i32_26 : i32
    %45 = tpu.assume_multiple %44, 8 : i32
    %cst_27 = arith.constant dense<0.000000e+00> : vector<8x16xf32>
    %46 = tpu.matmul %0, %43, %cst_27 {dimension_numbers = #tpu.dot_dimension_numbers<[1], [0], [0], [1], [0, 0, 1, 1], [], []>} : vector<8x16xf32>, vector<16x16xf32>, vector<8x16xf32> -> vector<8x16xf32>
    %47 = arith.index_cast %45 : i32 to index
    %c0_28 = arith.constant 0 : index
    %48 = vector.load %arg6[%47, %c0_28] : memref<64x16xf32, #tpu.memory_space<vmem>>, vector<8x16xf32>
    tpu.vector_store %arg6[%47, %c0_28], %46 {strides = array<i32>} : memref<64x16xf32, #tpu.memory_space<vmem>>, vector<8x16xf32>,
    %c6_i32 = arith.constant 6 : i32
    %49 = arith.index_cast %c6_i32 : i32 to index
    %c0_29 = arith.constant 0 : index
    %c0_30 = arith.constant 0 : index
    %50 = vector.load %arg4[%49, %c0_29, %c0_30] : memref<8x16x16xf32, #tpu.memory_space<vmem>>, vector<1x16x16xf32>
    %51 = vector.shape_cast %50 : vector<1x16x16xf32> to vector<16x16xf32>
    %c8_i32_31 = arith.constant 8 : i32
    %52 = arith.muli %c6_i32, %c8_i32_31 : i32
    %53 = tpu.assume_multiple %52, 8 : i32
    %cst_32 = arith.constant dense<0.000000e+00> : vector<8x16xf32>
    %54 = tpu.matmul %0, %51, %cst_32 {dimension_numbers = #tpu.dot_dimension_numbers<[1], [0], [0], [1], [0, 0, 1, 1], [], []>} : vector<8x16xf32>, vector<16x16xf32>, vector<8x16xf32> -> vector<8x16xf32>
    %55 = arith.index_cast %53 : i32 to index
    %c0_33 = arith.constant 0 : index
    %56 = vector.load %arg6[%55, %c0_33] : memref<64x16xf32, #tpu.memory_space<vmem>>, vector<8x16xf32>
    tpu.vector_store %arg6[%55, %c0_33], %54 {strides = array<i32>} : memref<64x16xf32, #tpu.memory_space<vmem>>, vector<8x16xf32>,
    %c7_i32 = arith.constant 7 : i32
    %57 = arith.index_cast %c7_i32 : i32 to index
    %c0_34 = arith.constant 0 : index
    %c0_35 = arith.constant 0 : index
    %58 = vector.load %arg4[%57, %c0_34, %c0_35] : memref<8x16x16xf32, #tpu.memory_space<vmem>>, vector<1x16x16xf32>
    %59 = vector.shape_cast %58 : vector<1x16x16xf32> to vector<16x16xf32>
    %c8_i32_36 = arith.constant 8 : i32
    %60 = arith.muli %c7_i32, %c8_i32_36 : i32
    %61 = tpu.assume_multiple %60, 8 : i32
    %cst_37 = arith.constant dense<0.000000e+00> : vector<8x16xf32>
    %62 = tpu.matmul %0, %59, %cst_37 {dimension_numbers = #tpu.dot_dimension_numbers<[1], [0], [0], [1], [0, 0, 1, 1], [], []>} : vector<8x16xf32>, vector<16x16xf32>, vector<8x16xf32> -> vector<8x16xf32>
    %63 = arith.index_cast %61 : i32 to index
    %c0_38 = arith.constant 0 : index
    %64 = vector.load %arg6[%63, %c0_38] : memref<64x16xf32, #tpu.memory_space<vmem>>, vector<8x16xf32>
    tpu.vector_store %arg6[%63, %c0_38], %62 {strides = array<i32>} : memref<64x16xf32, #tpu.memory_space<vmem>>, vector<8x16xf32>,
    %c8_i32_39 = arith.constant 8 : i32
    %c0_40 = arith.constant 0 : index
    %c0_41 = arith.constant 0 : index
    %65 = vector.load %arg6[%c0_40, %c0_41] : memref<64x16xf32, #tpu.memory_space<vmem>>, vector<64x16xf32>
    %c0_42 = arith.constant 0 : index
    %c0_43 = arith.constant 0 : index
    %66 = vector.load %arg3[%c0_42, %c0_43] : memref<16x128xf32, #tpu.memory_space<vmem>>, vector<16x128xf32>
    %cst_44 = arith.constant dense<0.000000e+00> : vector<64x128xf32>
    %67 = tpu.matmul %65, %66, %cst_44 {dimension_numbers = #tpu.dot_dimension_numbers<[1], [0], [0], [1], [0, 0, 1, 1], [], []>} : vector<64x16xf32>, vector<16x128xf32>, vector<64x128xf32> -> vector<64x128xf32>
    %68 = vector.shape_cast %67 : vector<64x128xf32> to vector<8x8x128xf32>
    %c0_45 = arith.constant 0 : index
    %c0_46 = arith.constant 0 : index
    %c0_47 = arith.constant 0 : index
    %69 = vector.load %arg5[%c0_45, %c0_46, %c0_47] : memref<8x8x128xf32, #tpu.memory_space<vmem>>, vector<8x8x128xf32>
    tpu.vector_store %arg5[%c0_45, %c0_46, %c0_47], %68 {strides = array<i32>} : memref<8x8x128xf32, #tpu.memory_space<vmem>>, vector<8x8x128xf32>,
    return
  }
  func.func @transform_0(%arg0: i32, %arg1: i32) -> (i32, i32) {
    %c0_i32 = arith.constant 0 : i32
    %c0_i32_0 = arith.constant 0 : i32
    return %arg1, %c0_i32 : i32, i32
  }
  func.func @transform_1(%arg0: i32, %arg1: i32) -> (i32, i32) {
    %c0_i32 = arith.constant 0 : i32
    %c0_i32_0 = arith.constant 0 : i32
    %c0_i32_1 = arith.constant 0 : i32
    return %c0_i32, %c0_i32_0 : i32, i32
  }
  func.func @transform_2(%arg0: i32, %arg1: i32) -> (i32, i32, i32) {
    %c0_i32 = arith.constant 0 : i32
    %c0_i32_0 = arith.constant 0 : i32
    %c0_i32_1 = arith.constant 0 : i32
    return %arg0, %c0_i32, %c0_i32_0 : i32, i32, i32
  }
  func.func @transform_3(%arg0: i32, %arg1: i32) -> (i32, i32, i32) {
    %c0_i32 = arith.constant 0 : i32
    %c0_i32_0 = arith.constant 0 : i32
    return %arg0, %arg1, %c0_i32 : i32, i32, i32
  }
}

module attributes {stable_mosaic.version = 11 : i64} {
  func.func @_resize_kernel(%arg0: i32, %arg1: i32, %arg2: memref<8x16xf32, #tpu.memory_space<vmem>>, %arg3: memref<16x128xf32, #tpu.memory_space<vmem>>, %arg4: memref<8x16x16xf32, #tpu.memory_space<vmem>>, %arg5: memref<8x8x128xf32, #tpu.memory_space<vmem>>, %arg6: memref<64x16xf32, #tpu.memory_space<vmem>>) attributes {dimension_semantics = [#tpu.dimension_semantics<parallel>, #tpu.dimension_semantics<parallel>], iteration_bounds = array<i64: 1, 1>, scalar_prefetch = 0 : i64, scratch_operands = 1 : i64, tpu.core_type = #tpu.core_type<tc>, window_params = [{transform_indices = @transform_0, window_bounds = array<i64: 8, 16>}, {pipeline_mode = #tpu.pipeline_mode<synchronous>, transform_indices = @transform_1, window_bounds = array<i64: 16, 128>}, {transform_indices = @transform_2, window_bounds = array<i64: 8, 16, 16>}, {transform_indices = @transform_3, window_bounds = array<i64: 8, 8, 128>}]} {
    %c0 = arith.constant 0 : index
    %c0_0 = arith.constant 0 : index
    %0 = vector.load %arg2[%c0, %c0_0] : memref<8x16xf32, #tpu.memory_space<vmem>>, vector<8x16xf32>
    %c0_i32 = arith.constant 0 : i32
    %1 = arith.index_cast %c0_i32 : i32 to index
    %c0_1 = arith.constant 0 : index
    %c0_2 = arith.constant 0 : index
    %2 = vector.load %arg4[%1, %c0_1, %c0_2] : memref<8x16x16xf32, #tpu.memory_space<vmem>>, vector<1x16x16xf32>
    %3 = vector.shape_cast %2 : vector<1x16x16xf32> to vector<16x16xf32>
    %c8_i32 = arith.constant 8 : i32
    %4 = arith.muli %c0_i32, %c8_i32 : i32
    %5 = tpu.assume_multiple %4, 8 : i32
    %cst = arith.constant dense<0.000000e+00> : vector<8x16xf32>
    %6 = tpu.matmul %0, %3, %cst {dimension_numbers = #tpu.dot_dimension_numbers<[1], [0], [0], [1], [0, 0, 1, 1], [], []>} : vector<8x16xf32>, vector<16x16xf32>, vector<8x16xf32> -> vector<8x16xf32>
    %7 = arith.index_cast %5 : i32 to index
    %c0_3 = arith.constant 0 : index
    %8 = vector.load %arg6[%7, %c0_3] : memref<64x16xf32, #tpu.memory_space<vmem>>, vector<8x16xf32>
    tpu.vector_store %arg6[%7, %c0_3], %6 {strides = array<i32>} : memref<64x16xf32, #tpu.memory_space<vmem>>, vector<8x16xf32>,
    %c1_i32 = arith.constant 1 : i32
    %9 = arith.index_cast %c1_i32 : i32 to index
    %c0_4 = arith.constant 0 : index
    %c0_5 = arith.constant 0 : index
    %10 = vector.load %arg4[%9, %c0_4, %c0_5] : memref<8x16x16xf32, #tpu.memory_space<vmem>>, vector<1x16x16xf32>
    %11 = vector.shape_cast %10 : vector<1x16x16xf32> to vector<16x16xf32>
    %c8_i32_6 = arith.constant 8 : i32
    %12 = arith.muli %c1_i32, %c8_i32_6 : i32
    %13 = tpu.assume_multiple %12, 8 : i32
    %cst_7 = arith.constant dense<0.000000e+00> : vector<8x16xf32>
    %14 = tpu.matmul %0, %11, %cst_7 {dimension_numbers = #tpu.dot_dimension_numbers<[1], [0], [0], [1], [0, 0, 1, 1], [], []>} : vector<8x16xf32>, vector<16x16xf32>, vector<8x16xf32> -> vector<8x16xf32>
    %15 = arith.index_cast %13 : i32 to index
    %c0_8 = arith.constant 0 : index
    %16 = vector.load %arg6[%15, %c0_8] : memref<64x16xf32, #tpu.memory_space<vmem>>, vector<8x16xf32>
    tpu.vector_store %arg6[%15, %c0_8], %14 {strides = array<i32>} : memref<64x16xf32, #tpu.memory_space<vmem>>, vector<8x16xf32>,
    %c2_i32 = arith.constant 2 : i32
    %17 = arith.index_cast %c2_i32 : i32 to index
    %c0_9 = arith.constant 0 : index
    %c0_10 = arith.constant 0 : index
    %18 = vector.load %arg4[%17, %c0_9, %c0_10] : memref<8x16x16xf32, #tpu.memory_space<vmem>>, vector<1x16x16xf32>
    %19 = vector.shape_cast %18 : vector<1x16x16xf32> to vector<16x16xf32>
    %c8_i32_11 = arith.constant 8 : i32
    %20 = arith.muli %c2_i32, %c8_i32_11 : i32
    %21 = tpu.assume_multiple %20, 8 : i32
    %cst_12 = arith.constant dense<0.000000e+00> : vector<8x16xf32>
    %22 = tpu.matmul %0, %19, %cst_12 {dimension_numbers = #tpu.dot_dimension_numbers<[1], [0], [0], [1], [0, 0, 1, 1], [], []>} : vector<8x16xf32>, vector<16x16xf32>, vector<8x16xf32> -> vector<8x16xf32>
    %23 = arith.index_cast %21 : i32 to index
    %c0_13 = arith.constant 0 : index
    %24 = vector.load %arg6[%23, %c0_13] : memref<64x16xf32, #tpu.memory_space<vmem>>, vector<8x16xf32>
    tpu.vector_store %arg6[%23, %c0_13], %22 {strides = array<i32>} : memref<64x16xf32, #tpu.memory_space<vmem>>, vector<8x16xf32>,
    %c3_i32 = arith.constant 3 : i32
    %25 = arith.index_cast %c3_i32 : i32 to index
    %c0_14 = arith.constant 0 : index
    %c0_15 = arith.constant 0 : index
    %26 = vector.load %arg4[%25, %c0_14, %c0_15] : memref<8x16x16xf32, #tpu.memory_space<vmem>>, vector<1x16x16xf32>
    %27 = vector.shape_cast %26 : vector<1x16x16xf32> to vector<16x16xf32>
    %c8_i32_16 = arith.constant 8 : i32
    %28 = arith.muli %c3_i32, %c8_i32_16 : i32
    %29 = tpu.assume_multiple %28, 8 : i32
    %cst_17 = arith.constant dense<0.000000e+00> : vector<8x16xf32>
    %30 = tpu.matmul %0, %27, %cst_17 {dimension_numbers = #tpu.dot_dimension_numbers<[1], [0], [0], [1], [0, 0, 1, 1], [], []>} : vector<8x16xf32>, vector<16x16xf32>, vector<8x16xf32> -> vector<8x16xf32>
    %31 = arith.index_cast %29 : i32 to index
    %c0_18 = arith.constant 0 : index
    %32 = vector.load %arg6[%31, %c0_18] : memref<64x16xf32, #tpu.memory_space<vmem>>, vector<8x16xf32>
    tpu.vector_store %arg6[%31, %c0_18], %30 {strides = array<i32>} : memref<64x16xf32, #tpu.memory_space<vmem>>, vector<8x16xf32>,
    %c4_i32 = arith.constant 4 : i32
    %33 = arith.index_cast %c4_i32 : i32 to index
    %c0_19 = arith.constant 0 : index
    %c0_20 = arith.constant 0 : index
    %34 = vector.load %arg4[%33, %c0_19, %c0_20] : memref<8x16x16xf32, #tpu.memory_space<vmem>>, vector<1x16x16xf32>
    %35 = vector.shape_cast %34 : vector<1x16x16xf32> to vector<16x16xf32>
    %c8_i32_21 = arith.constant 8 : i32
    %36 = arith.muli %c4_i32, %c8_i32_21 : i32
    %37 = tpu.assume_multiple %36, 8 : i32
    %cst_22 = arith.constant dense<0.000000e+00> : vector<8x16xf32>
    %38 = tpu.matmul %0, %35, %cst_22 {dimension_numbers = #tpu.dot_dimension_numbers<[1], [0], [0], [1], [0, 0, 1, 1], [], []>} : vector<8x16xf32>, vector<16x16xf32>, vector<8x16xf32> -> vector<8x16xf32>
    %39 = arith.index_cast %37 : i32 to index
    %c0_23 = arith.constant 0 : index
    %40 = vector.load %arg6[%39, %c0_23] : memref<64x16xf32, #tpu.memory_space<vmem>>, vector<8x16xf32>
    tpu.vector_store %arg6[%39, %c0_23], %38 {strides = array<i32>} : memref<64x16xf32, #tpu.memory_space<vmem>>, vector<8x16xf32>,
    %c5_i32 = arith.constant 5 : i32
    %41 = arith.index_cast %c5_i32 : i32 to index
    %c0_24 = arith.constant 0 : index
    %c0_25 = arith.constant 0 : index
    %42 = vector.load %arg4[%41, %c0_24, %c0_25] : memref<8x16x16xf32, #tpu.memory_space<vmem>>, vector<1x16x16xf32>
    %43 = vector.shape_cast %42 : vector<1x16x16xf32> to vector<16x16xf32>
    %c8_i32_26 = arith.constant 8 : i32
    %44 = arith.muli %c5_i32, %c8_i32_26 : i32
    %45 = tpu.assume_multiple %44, 8 : i32
    %cst_27 = arith.constant dense<0.000000e+00> : vector<8x16xf32>
    %46 = tpu.matmul %0, %43, %cst_27 {dimension_numbers = #tpu.dot_dimension_numbers<[1], [0], [0], [1], [0, 0, 1, 1], [], []>} : vector<8x16xf32>, vector<16x16xf32>, vector<8x16xf32> -> vector<8x16xf32>
    %47 = arith.index_cast %45 : i32 to index
    %c0_28 = arith.constant 0 : index
    %48 = vector.load %arg6[%47, %c0_28] : memref<64x16xf32, #tpu.memory_space<vmem>>, vector<8x16xf32>
    tpu.vector_store %arg6[%47, %c0_28], %46 {strides = array<i32>} : memref<64x16xf32, #tpu.memory_space<vmem>>, vector<8x16xf32>,
    %c6_i32 = arith.constant 6 : i32
    %49 = arith.index_cast %c6_i32 : i32 to index
    %c0_29 = arith.constant 0 : index
    %c0_30 = arith.constant 0 : index
    %50 = vector.load %arg4[%49, %c0_29, %c0_30] : memref<8x16x16xf32, #tpu.memory_space<vmem>>, vector<1x16x16xf32>
    %51 = vector.shape_cast %50 : vector<1x16x16xf32> to vector<16x16xf32>
    %c8_i32_31 = arith.constant 8 : i32
    %52 = arith.muli %c6_i32, %c8_i32_31 : i32
    %53 = tpu.assume_multiple %52, 8 : i32
    %cst_32 = arith.constant dense<0.000000e+00> : vector<8x16xf32>
    %54 = tpu.matmul %0, %51, %cst_32 {dimension_numbers = #tpu.dot_dimension_numbers<[1], [0], [0], [1], [0, 0, 1, 1], [], []>} : vector<8x16xf32>, vector<16x16xf32>, vector<8x16xf32> -> vector<8x16xf32>
    %55 = arith.index_cast %53 : i32 to index
    %c0_33 = arith.constant 0 : index
    %56 = vector.load %arg6[%55, %c0_33] : memref<64x16xf32, #tpu.memory_space<vmem>>, vector<8x16xf32>
    tpu.vector_store %arg6[%55, %c0_33], %54 {strides = array<i32>} : memref<64x16xf32, #tpu.memory_space<vmem>>, vector<8x16xf32>,
    %c7_i32 = arith.constant 7 : i32
    %57 = arith.index_cast %c7_i32 : i32 to index
    %c0_34 = arith.constant 0 : index
    %c0_35 = arith.constant 0 : index
    %58 = vector.load %arg4[%57, %c0_34, %c0_35] : memref<8x16x16xf32, #tpu.memory_space<vmem>>, vector<1x16x16xf32>
    %59 = vector.shape_cast %58 : vector<1x16x16xf32> to vector<16x16xf32>
    %c8_i32_36 = arith.constant 8 : i32
    %60 = arith.muli %c7_i32, %c8_i32_36 : i32
    %61 = tpu.assume_multiple %60, 8 : i32
    %cst_37 = arith.constant dense<0.000000e+00> : vector<8x16xf32>
    %62 = tpu.matmul %0, %59, %cst_37 {dimension_numbers = #tpu.dot_dimension_numbers<[1], [0], [0], [1], [0, 0, 1, 1], [], []>} : vector<8x16xf32>, vector<16x16xf32>, vector<8x16xf32> -> vector<8x16xf32>
    %63 = arith.index_cast %61 : i32 to index
    %c0_38 = arith.constant 0 : index
    %64 = vector.load %arg6[%63, %c0_38] : memref<64x16xf32, #tpu.memory_space<vmem>>, vector<8x16xf32>
    tpu.vector_store %arg6[%63, %c0_38], %62 {strides = array<i32>} : memref<64x16xf32, #tpu.memory_space<vmem>>, vector<8x16xf32>,
    %c8_i32_39 = arith.constant 8 : i32
    %c0_40 = arith.constant 0 : index
    %c0_41 = arith.constant 0 : index
    %65 = vector.load %arg6[%c0_40, %c0_41] : memref<64x16xf32, #tpu.memory_space<vmem>>, vector<64x16xf32>
    %c0_42 = arith.constant 0 : index
    %c0_43 = arith.constant 0 : index
    %66 = vector.load %arg3[%c0_42, %c0_43] : memref<16x128xf32, #tpu.memory_space<vmem>>, vector<16x128xf32>
    %cst_44 = arith.constant dense<0.000000e+00> : vector<64x128xf32>
    %67 = tpu.matmul %65, %66, %cst_44 {dimension_numbers = #tpu.dot_dimension_numbers<[1], [0], [0], [1], [0, 0, 1, 1], [], []>} : vector<64x16xf32>, vector<16x128xf32>, vector<64x128xf32> -> vector<64x128xf32>
    %68 = vector.shape_cast %67 : vector<64x128xf32> to vector<8x8x128xf32>
    %c0_45 = arith.constant 0 : index
    %c0_46 = arith.constant 0 : index
    %c0_47 = arith.constant 0 : index
    %69 = vector.load %arg5[%c0_45, %c0_46, %c0_47] : memref<8x8x128xf32, #tpu.memory_space<vmem>>, vector<8x8x128xf32>
    tpu.vector_store %arg5[%c0_45, %c0_46, %c0_47], %68 {strides = array<i32>} : memref<8x8x128xf32, #tpu.memory_space<vmem>>, vector<8x8x128xf32>,
    return
  }
  func.func @transform_0(%arg0: i32, %arg1: i32) -> (i32, i32) {
    %c0_i32 = arith.constant 0 : i32
    %c0_i32_0 = arith.constant 0 : i32
    return %arg1, %c0_i32 : i32, i32
  }
  func.func @transform_1(%arg0: i32, %arg1: i32) -> (i32, i32) {
    %c0_i32 = arith.constant 0 : i32
    %c0_i32_0 = arith.constant 0 : i32
    %c0_i32_1 = arith.constant 0 : i32
    return %c0_i32, %c0_i32_0 : i32, i32
  }
  func.func @transform_2(%arg0: i32, %arg1: i32) -> (i32, i32, i32) {
    %c0_i32 = arith.constant 0 : i32
    %c0_i32_0 = arith.constant 0 : i32
    %c0_i32_1 = arith.constant 0 : i32
    return %arg0, %c0_i32, %c0_i32_0 : i32, i32, i32
  }
  func.func @transform_3(%arg0: i32, %arg1: i32) -> (i32, i32, i32) {
    %c0_i32 = arith.constant 0 : i32
    %c0_i32_0 = arith.constant 0 : i32
    return %arg0, %arg1, %c0_i32 : i32, i32, i32
  }
}

</mosaic_0001>

<bundles_post_ra>
// kernel: tpu_custom_call.1
= control target key start
LH: loop header
LB: loop body
LE: loop exit
PB: predicated region body
PF: predicated region fallthrough
CT: control target
= control target key end

     0   :  { %8 = vsyncpa [#allocation4], 0  ;;  %s1195_s0 = inlined_call_operand.hbm [shape: f32[8,16], index: 0, kind: input, shape index: {}]   ;;  %s1196_s1 = inlined_call_operand.hbm [shape: f32[16,128], index: 1, kind: input, shape index: {}]   ;;  %s1197_s2 = inlined_call_operand.hbm [shape: f32[8,16,16], index: 2, kind: input, shape index: {}]   ;;  %s1198_s3 = inlined_call_operand.hbm [shape: f32[8,8,128], index: 3, kind: output, shape index: {}]  }
   0x1   :  { %9 = vsyncpa [#allocation7], 0 }
   0x2   :  { %10 = vsyncpa [#allocation5], 0  ;;  %s1077_s12 = smov [#allocation6]   ;;  %s983_s16 = scalar_lea.hbm %s1196_s1, 256 }
   0x3   :  { %s26_s13 = sshll.u32 %s1077_s12, 4  ;;  %p984_p0 = scmp.ne.s32.totalorder %s1196_s1, %s983_s16  ;;  %s27_s13 = int_to_ptr.vmem [resolvable:$true] %s26_s13 }
   0x4   :  { %p987_p1 = scmp.lt.u32.totalorder %s983_s16, %s1196_s1 }
   0x6   :  { %p989_p2 = pnand %p987_p1, %p984_p0 }
   0x8   :  { %992 = shalt.err (!%p989_p2)
}
   0x9   :  { %s993_s21 = scalar_lea.vmem %s27_s13, 256  ;;  %p998_p4 = scmp.lt.s32.totalorder %s27_s13, %s27_s13 }
   0xa   :  { %p994_p3 = scmp.ne.s32.totalorder %s27_s13, %s993_s21  ;;  %p999_p5 = scmp.lt.s32.totalorder %s993_s21, %s993_s21 }
   0xc   :  { %p1000_p6 = por %p999_p5, %p998_p4 }
   0xe   :  { %p1001_p7 = pnand %p1000_p6, %p994_p3 }
  0x10   :  { %1004 = shalt.err (!%p1001_p7)
}
  0x11   :  { %s1078_s22 = smov 128   ;;  %s1079_s23 = smov 8  }
  0x12   :  { %32 = dma.hbm_to_vmem [thread:$0]  %s1196_s1, 256, %s27_s13, [#allocation7], %s1078_s22, %s1078_s22, %s1079_s23  }
  0x13   :  { %s1080_s26 = smov [#allocation3]   ;;  %s1081_s28 = smov [#allocation8]  }
  0x14   :  { %s17_s27 = sshll.u32 %s1080_s26, 4  ;;  %s38_s29 = sshll.u32 %s1081_s28, 4  ;;  %s18_s27 = int_to_ptr.vmem [resolvable:$true] %s17_s27  ;;  %s39_s29 = int_to_ptr.vmem [resolvable:$true] %s38_s29 }
  0x15   :  { %s1005_s5 = scalar_lea.hbm %s1195_s0, 128 }
  0x16   :  { %p1006_p8 = scmp.ne.s32.totalorder %s1195_s0, %s1005_s5  ;;  %p1009_p9 = scmp.lt.u32.totalorder %s1005_s5, %s1195_s0 }
  0x18   :  { %p1011_p10 = pnand %p1009_p9, %p1006_p8 }
  0x1a   :  { %1014 = shalt.err (!%p1011_p10)
}
  0x1b   :  { %s1015_s1 = scalar_lea.vmem %s18_s27, 128  ;;  %p1020_p12 = scmp.lt.s32.totalorder %s18_s27, %s18_s27 }
  0x1c   :  { %p1016_p11 = scmp.ne.s32.totalorder %s18_s27, %s1015_s1  ;;  %p1021_p13 = scmp.lt.s32.totalorder %s1015_s1, %s1015_s1 }
  0x1e   :  { %p1022_p0 = por %p1021_p13, %p1020_p12 }
  0x20   :  { %p1023_p1 = pnand %p1022_p0, %p1016_p11 }
  0x22   :  { %1026 = shalt.err (!%p1023_p1)
}
  0x23   :  { %20 = dma.hbm_to_vmem [thread:$0]  %s1195_s0, 128, %s18_s27, [#allocation4]  }
  0x24   :  { %s1027_s14 = scalar_lea.hbm %s1197_s2, 2048 }
  0x25   :  { %p1028_p2 = scmp.ne.s32.totalorder %s1197_s2, %s1027_s14  ;;  %p1031_p3 = scmp.lt.u32.totalorder %s1027_s14, %s1197_s2 }
  0x27   :  { %p1033_p4 = pnand %p1031_p3, %p1028_p2 }
  0x29   :  { %1036 = shalt.err (!%p1033_p4)
}
  0x2a   :  { %s1037_s19 = scalar_lea.vmem %s39_s29, 2048  ;;  %p1042_p6 = scmp.lt.s32.totalorder %s39_s29, %s39_s29 }
  0x2b   :  { %p1038_p5 = scmp.ne.s32.totalorder %s39_s29, %s1037_s19  ;;  %p1043_p7 = scmp.lt.s32.totalorder %s1037_s19, %s1037_s19 }
  0x2d   :  { %p1044_p8 = por %p1043_p7, %p1042_p6 }
  0x2f   :  { %p1045_p9 = pnand %p1044_p8, %p1038_p5 }
  0x31   :  { %1048 = shalt.err (!%p1045_p9)
}
  0x32   :  { %44 = dma.hbm_to_vmem [thread:$0]  %s1197_s2, 2048, %s39_s29, [#allocation7], %s1078_s22, %s1078_s22, %s1079_s23  }
  0x33   :  { %1071 = dma.done.wait [#allocation4], 128  }
  0x34   :  { %1072 = vsyncadd [#allocation4], 4294967168 }
  0x35   :  { %1073 = dma.done.wait [#allocation7], 2304  }
  0x36   :  { %1074 = vsyncadd [#allocation7], 4294964992  ;;  %v1082_v0 = vmov 0.0|0.0   ;;  %vm1083_vm0 = vmmov 0   ;;  %v1084_v1 = vmov 0.0   ;;  %v55_v2 = vld [vmem:[#allocation8] sm:$0xff] }
  0x37   :  { %944 = vmatprep.subr.bf16.mxu0 %v1082_v0  ;;  %947 = vmatprep.subr.bf16.mxu1 %v1082_v0  ;;  %v56_v3 = vld [vmem:[#allocation8 + $0x8] sm:$0xff]  ;;  %v133_v4 = vld [vmem:[#allocation8 + $0x10] sm:$0xff]  ;;  %v134_v6 = vld [vmem:[#allocation8 + $0x18] sm:$0xff]  ;;  %vm57_vm1 = vcmask 130048   ;;  %s1085_s2 = smov [#allocation9]  }
  0x38   :  { %876 = vmatprep.mubr.msk.f32.mxu0 %vm1083_vm0, %v1084_v1  ;;  %883 = vmatprep.mubr.msk.f32.mxu1 %vm1083_vm0, %v1084_v1  ;;  %v945_v5 = vpack.c.bf16 %v56_v3, %v55_v2  ;;  %v208_v7 = vld [vmem:[#allocation8 + $0x20] sm:$0xff]  ;;  %v948_v8 = vpack.c.bf16 %v134_v6, %v133_v4  ;;  %v209_v9 = vld [vmem:[#allocation8 + $0x28] sm:$0xff]  ;;  %v283_v10 = vld [vmem:[#allocation8 + $0x30] sm:$0xff]  ;;  %s809_s21 = sshll.u32 %s1085_s2, 4  ;;  %s810_s21 = int_to_ptr.vmem [resolvable:$true] %s809_s21 }
  0x39   :  { %v284_v11 = vld [vmem:[#allocation8 + $0x38] sm:$0xff]  ;;  %v54_v12 = vld [vmem:[#allocation3] sm:$0xff]  ;;  %v951_v13 = vpack.c.bf16 %v209_v9, %v208_v7  ;;  %v358_v15 = vld [vmem:[#allocation8 + $0x40] sm:$0xff]  ;;  %s1049_s24 = scalar_lea.vmem %s810_s21, 1024  ;;  %p1054_p11 = scmp.lt.s32.totalorder %s810_s21, %s810_s21 }
  0x3a   :  { %946 = vmatpush3.bf16.msra.mxu0 %v945_v5  ;;  %949 = vmatpush3.bf16.msra.mxu1 %v948_v8  ;;  %v954_v14 = vpack.c.bf16 %v284_v11, %v283_v10  ;;  %v359_v16 = vld [vmem:[#allocation8 + $0x48] sm:$0xff]  ;;  %v433_v17 = vld [vmem:[#allocation8 + $0x50] sm:$0xff]  ;;  %v434_v18 = vld [vmem:[#allocation8 + $0x58] sm:$0xff]  ;;  %p1050_p10 = scmp.ne.s32.totalorder %s810_s21, %s1049_s24  ;;  %p1055_p12 = scmp.lt.s32.totalorder %s1049_s24, %s1049_s24 }
  0x3b   :  { %950 = vmatprep.subr.bf16.mxu0 %v1082_v0  ;;  %953 = vmatprep.subr.bf16.mxu1 %v1082_v0  ;;  %v957_v19 = vpack.c.bf16 %v359_v16, %v358_v15  ;;  %v960_v20 = vpack.c.bf16 %v434_v18, %v433_v17  ;;  %v508_v21 = vld [vmem:[#allocation8 + $0x60] sm:$0xff]  ;;  %v509_v22 = vld [vmem:[#allocation8 + $0x68] sm:$0xff]  ;;  %v583_v23 = vld [vmem:[#allocation8 + $0x70] sm:$0xff] }
  0x3c   :  { %v584_v24 = vld [vmem:[#allocation8 + $0x78] sm:$0xff]  ;;  %v963_v25 = vpack.c.bf16 %v509_v22, %v508_v21  ;;  %v665_v27 = vld [vmem:[#allocation6] sm:$0xff]  ;;  %p1056_p13 = por %p1055_p12, %p1054_p11 }
  0x3d   :  { %877 = vmatmul.mubr.msk.f32.vlgmr.msra.gmra.mrb[0].mxu0 %vm57_vm1, %v54_v12  ;;  %884 = vmatmul.mubr.msk.f32.vlgmr.msra.gmra.mrb[0].mxu1 %vm57_vm1, %v54_v12  ;;  %v966_v26 = vpack.c.bf16 %v584_v24, %v583_v23  ;;  %v666_v28 = vld [vmem:[#allocation6 + $0x8] sm:$0xff] }
  0x3e   :  { %952 = vmatpush3.bf16.msra.mxu0 %v951_v13  ;;  %955 = vmatpush3.bf16.msra.mxu1 %v954_v14  ;;  %v968_v29 = vpack.c.bf16 %v666_v28, %v665_v27  ;;  %p1057_p0 = pnand %p1056_p13, %p1050_p10 }
  0x3f   :  { %890 = vmatprep.mubr.msk.f32.mxu0 %vm1083_vm0, %v1084_v1  ;;  %897 = vmatprep.mubr.msk.f32.mxu1 %vm1083_vm0, %v1084_v1 }
  0x40   :  { %956 = vmatprep.subr.bf16.mxu0 %v1082_v0  ;;  %959 = vmatprep.subr.bf16.mxu1 %v1082_v0 }
  0x41   :  { %891 = vmatmul.mubr.msk.f32.vlgmr.msra.gmra.mrb[2].mxu0 %vm57_vm1, %v54_v12  ;;  %898 = vmatmul.mubr.msk.f32.vlgmr.msra.gmra.mrb[2].mxu1 %vm57_vm1, %v54_v12 }
  0x42   :  { %958 = vmatpush3.bf16.msra.mxu0 %v957_v19  ;;  %961 = vmatpush3.bf16.msra.mxu1 %v960_v20 }
  0x43   :  { %904 = vmatprep.mubr.msk.f32.mxu0 %vm1083_vm0, %v1084_v1  ;;  %911 = vmatprep.mubr.msk.f32.mxu1 %vm1083_vm0, %v1084_v1 }
  0x44   :  { %962 = vmatprep.subr.bf16.mxu0 %v1082_v0  ;;  %965 = vmatprep.subr.bf16.mxu1 %v1082_v0 }
  0x45   :  { %905 = vmatmul.mubr.msk.f32.vlgmr.msra.gmra.mrb[4].mxu0 %vm57_vm1, %v54_v12  ;;  %912 = vmatmul.mubr.msk.f32.vlgmr.msra.gmra.mrb[4].mxu1 %vm57_vm1, %v54_v12 }
  0x46   :  { %964 = vmatpush3.bf16.msra.mxu0 %v963_v25  ;;  %967 = vmatpush3.bf16.msra.mxu1 %v966_v26 }
  0x47   :  { %918 = vmatprep.mubr.msk.f32.mxu0 %vm1083_vm0, %v1084_v1  ;;  %925 = vmatprep.mubr.msk.f32.mxu1 %vm1083_vm0, %v1084_v1 }
  0x48   :  { %969 = vmatprep.subr.bf16.mxu0 %v968_v29  ;;  %972 = vmatprep.subr.bf16.mxu1 %v968_v29 }
  0x49   :  { %919 = vmatmul.mubr.msk.f32.vlgmr.msra.gmra.mrb[6].mxu0 %vm57_vm1, %v54_v12  ;;  %926 = vmatmul.mubr.msk.f32.vlgmr.msra.gmra.mrb[6].mxu1 %vm57_vm1, %v54_v12 }
  0x4a   :  { %971 = vmatpush3.bf16.msra.mxu0 %v968_v29  ;;  %973 = vmatpush3.bf16.msra.mxu1 %v968_v29 }
 0x110   :  { %v127_v30 = vpop.f32.mrb[0].mxu0  ;;  %v201_v32 = vpop.f32.mrb[0].mxu1 }
 0x111   :  { %131 = vst.msk [vmem:[#allocation2] sm:$0xff] %vm57_vm1, %v127_v30  ;;  %v878_v31 = vpop.f32.mrb[1].mxu0  ;;  %206 = vst.msk [vmem:[#allocation2 + $0x8] sm:$0xff] %vm57_vm1, %v201_v32  ;;  %v885_v33 = vpop.f32.mrb[1].mxu1 }
 0x114   :  { %v276_v34 = vpop.f32.mrb[2].mxu0  ;;  %v351_v36 = vpop.f32.mrb[2].mxu1 }
 0x115   :  { %281 = vst.msk [vmem:[#allocation2 + $0x10] sm:$0xff] %vm57_vm1, %v276_v34  ;;  %v892_v35 = vpop.f32.mrb[3].mxu0  ;;  %356 = vst.msk [vmem:[#allocation2 + $0x18] sm:$0xff] %vm57_vm1, %v351_v36  ;;  %v899_v37 = vpop.f32.mrb[3].mxu1 }
 0x118   :  { %v426_v38 = vpop.f32.mrb[4].mxu0  ;;  %v657_v39 = vld [vmem:[#allocation2] sm:$0xff]  ;;  %v501_v41 = vpop.f32.mrb[4].mxu1  ;;  %v658_v42 = vld [vmem:[#allocation2 + $0x8] sm:$0xff] }
 0x119   :  { %431 = vst.msk [vmem:[#allocation2 + $0x20] sm:$0xff] %vm57_vm1, %v426_v38  ;;  %v906_v40 = vpop.f32.mrb[5].mxu0  ;;  %932 = vmatprep.mubr.msk.f32.mxu0 %vm57_vm1, %v657_v39  ;;  %506 = vst.msk [vmem:[#allocation2 + $0x28] sm:$0xff] %vm57_vm1, %v501_v41  ;;  %v913_v43 = vpop.f32.mrb[5].mxu1 }
 0x11a   :  { %933 = vmatmul.mubr.msk.f32.vlgmr.msra.gmra.mrb[8].mxu0 %vm57_vm1, %v658_v42 }
 0x11c   :  { %v576_v44 = vpop.f32.mrb[6].mxu0  ;;  %v659_v45 = vld [vmem:[#allocation2 + $0x10] sm:$0xff]  ;;  %v651_v47 = vpop.f32.mrb[6].mxu1  ;;  %v660_v48 = vld [vmem:[#allocation2 + $0x18] sm:$0xff] }
 0x11d   :  { %581 = vst.msk [vmem:[#allocation2 + $0x30] sm:$0xff] %vm57_vm1, %v576_v44  ;;  %v920_v46 = vpop.f32.mrb[7].mxu0  ;;  %935 = vmatprep.mubr.msk.f32.mxu0 %vm57_vm1, %v659_v45  ;;  %656 = vst.msk [vmem:[#allocation2 + $0x38] sm:$0xff] %vm57_vm1, %v651_v47  ;;  %v927_v49 = vpop.f32.mrb[7].mxu1 }
 0x11e   :  { %936 = vmatmul.mubr.msk.f32.gmra.mrb[10].mxu0 %vm57_vm1, %v660_v48 }
 0x120   :  { %v661_v50 = vld [vmem:[#allocation2 + $0x20] sm:$0xff]  ;;  %v662_v51 = vld [vmem:[#allocation2 + $0x28] sm:$0xff] }
 0x121   :  { %938 = vmatprep.mubr.msk.f32.mxu1 %vm57_vm1, %v661_v50 }
 0x122   :  { %939 = vmatmul.mubr.msk.f32.vlgmr.msra.gmra.mrb[8].mxu1 %vm57_vm1, %v662_v51 }
 0x124   :  { %v663_v52 = vld [vmem:[#allocation2 + $0x30] sm:$0xff]  ;;  %v664_v53 = vld [vmem:[#allocation2 + $0x38] sm:$0xff] }
 0x125   :  { %941 = vmatprep.mubr.msk.f32.mxu1 %vm57_vm1, %v663_v52 }
 0x126   :  { %942 = vmatmul.mubr.msk.f32.gmra.mrb[10].mxu1 %vm57_vm1, %v664_v53 }
 0x1ed   :  { %v934_v54 = vpop.f32.mrb[8].mxu0 }
 0x1ee   :  { %797 = vst [vmem:[#allocation9 + $0x8] sm:$0xff] %v934_v54  ;;  %v757_v55 = vpop.f32.mrb[9].mxu0 }
 0x1ef   :  { %796 = vst [vmem:[#allocation9] sm:$0xff] %v757_v55 }
 0x1f1   :  { %v937_v56 = vpop.f32.mrb[10].mxu0 }
 0x1f2   :  { %799 = vst [vmem:[#allocation9 + $0x18] sm:$0xff] %v937_v56  ;;  %v767_v57 = vpop.f32.mrb[11].mxu0 }
 0x1f3   :  { %798 = vst [vmem:[#allocation9 + $0x10] sm:$0xff] %v767_v57 }
 0x1f5   :  { %v940_v58 = vpop.f32.mrb[8].mxu1 }
 0x1f6   :  { %801 = vst [vmem:[#allocation9 + $0x28] sm:$0xff] %v940_v58  ;;  %v777_v59 = vpop.f32.mrb[9].mxu1 }
 0x1f7   :  { %800 = vst [vmem:[#allocation9 + $0x20] sm:$0xff] %v777_v59 }
 0x1f9   :  { %v943_v60 = vpop.f32.mrb[10].mxu1 }
 0x1fa   :  { %803 = vst [vmem:[#allocation9 + $0x38] sm:$0xff] %v943_v60  ;;  %v787_v61 = vpop.f32.mrb[11].mxu1 }
 0x1fb   :  { %802 = vst [vmem:[#allocation9 + $0x30] sm:$0xff] %v787_v61 }
 0x1fc   :  { %1060 = shalt.err (!%p1057_p0)
}
 0x1fd   :  { %s1061_s27 = scalar_lea.hbm %s1198_s3, 1024 }
 0x1fe   :  { %p1062_p1 = scmp.ne.s32.totalorder %s1198_s3, %s1061_s27  ;;  %p1065_p2 = scmp.lt.u32.totalorder %s1061_s27, %s1198_s3 }
 0x200   :  { %p1067_p3 = pnand %p1065_p2, %p1062_p1 }
 0x202   :  { %1070 = shalt.err (!%p1067_p3)
}
 0x203   :  { %815 = dma.vmem_to_hbm [thread:$0]  %s810_s21, 1024, %s1198_s3, [#allocation5], %s1078_s22, %s1078_s22, %s1079_s23  }
 0x204   :  { %1075 = dma.done.wait [#allocation5], 1024  }
 0x205   :  { %1076 = vsyncadd [#allocation5], 4294966272 }
 0x206   :  { %819 = vsyncpa [#allocation4], 1 }
 0x207   :  { %820 = vsyncpa [#allocation7], 1 }
 0x208   :  { %821 = vsyncpa [#allocation5], 1 }

// kernel: tpu_custom_call.1
= control target key start
LH: loop header
LB: loop body
LE: loop exit
PB: predicated region body
PF: predicated region fallthrough
CT: control target
= control target key end

     0   :  { %8 = vsyncpa [#allocation4], 0  ;;  %s1195_s0 = inlined_call_operand.hbm [shape: f32[8,16], index: 0, kind: input, shape index: {}]   ;;  %s1196_s1 = inlined_call_operand.hbm [shape: f32[16,128], index: 1, kind: input, shape index: {}]   ;;  %s1197_s2 = inlined_call_operand.hbm [shape: f32[8,16,16], index: 2, kind: input, shape index: {}]   ;;  %s1198_s3 = inlined_call_operand.hbm [shape: f32[8,8,128], index: 3, kind: output, shape index: {}]  }
   0x1   :  { %9 = vsyncpa [#allocation7], 0 }
   0x2   :  { %10 = vsyncpa [#allocation5], 0  ;;  %s1077_s12 = smov [#allocation6]   ;;  %s983_s16 = scalar_lea.hbm %s1196_s1, 256 }
   0x3   :  { %s26_s13 = sshll.u32 %s1077_s12, 4  ;;  %p984_p0 = scmp.ne.s32.totalorder %s1196_s1, %s983_s16  ;;  %s27_s13 = int_to_ptr.vmem [resolvable:$true] %s26_s13 }
   0x4   :  { %p987_p1 = scmp.lt.u32.totalorder %s983_s16, %s1196_s1 }
   0x6   :  { %p989_p2 = pnand %p987_p1, %p984_p0 }
   0x8   :  { %992 = shalt.err (!%p989_p2)
}
   0x9   :  { %s993_s21 = scalar_lea.vmem %s27_s13, 256  ;;  %p998_p4 = scmp.lt.s32.totalorder %s27_s13, %s27_s13 }
   0xa   :  { %p994_p3 = scmp.ne.s32.totalorder %s27_s13, %s993_s21  ;;  %p999_p5 = scmp.lt.s32.totalorder %s993_s21, %s993_s21 }
   0xc   :  { %p1000_p6 = por %p999_p5, %p998_p4 }
   0xe   :  { %p1001_p7 = pnand %p1000_p6, %p994_p3 }
  0x10   :  { %1004 = shalt.err (!%p1001_p7)
}
  0x11   :  { %s1078_s22 = smov 128   ;;  %s1079_s23 = smov 8  }
  0x12   :  { %32 = dma.hbm_to_vmem [thread:$0]  %s1196_s1, 256, %s27_s13, [#allocation7], %s1078_s22, %s1078_s22, %s1079_s23  }
  0x13   :  { %s1080_s26 = smov [#allocation3]   ;;  %s1081_s28 = smov [#allocation8]  }
  0x14   :  { %s17_s27 = sshll.u32 %s1080_s26, 4  ;;  %s38_s29 = sshll.u32 %s1081_s28, 4  ;;  %s18_s27 = int_to_ptr.vmem [resolvable:$true] %s17_s27  ;;  %s39_s29 = int_to_ptr.vmem [resolvable:$true] %s38_s29 }
  0x15   :  { %s1005_s5 = scalar_lea.hbm %s1195_s0, 128 }
  0x16   :  { %p1006_p8 = scmp.ne.s32.totalorder %s1195_s0, %s1005_s5  ;;  %p1009_p9 = scmp.lt.u32.totalorder %s1005_s5, %s1195_s0 }
  0x18   :  { %p1011_p10 = pnand %p1009_p9, %p1006_p8 }
  0x1a   :  { %1014 = shalt.err (!%p1011_p10)
}
  0x1b   :  { %s1015_s1 = scalar_lea.vmem %s18_s27, 128  ;;  %p1020_p12 = scmp.lt.s32.totalorder %s18_s27, %s18_s27 }
  0x1c   :  { %p1016_p11 = scmp.ne.s32.totalorder %s18_s27, %s1015_s1  ;;  %p1021_p13 = scmp.lt.s32.totalorder %s1015_s1, %s1015_s1 }
  0x1e   :  { %p1022_p0 = por %p1021_p13, %p1020_p12 }
  0x20   :  { %p1023_p1 = pnand %p1022_p0, %p1016_p11 }
  0x22   :  { %1026 = shalt.err (!%p1023_p1)
}
  0x23   :  { %20 = dma.hbm_to_vmem [thread:$0]  %s1195_s0, 128, %s18_s27, [#allocation4]  }
  0x24   :  { %s1027_s14 = scalar_lea.hbm %s1197_s2, 2048 }
  0x25   :  { %p1028_p2 = scmp.ne.s32.totalorder %s1197_s2, %s1027_s14  ;;  %p1031_p3 = scmp.lt.u32.totalorder %s1027_s14, %s1197_s2 }
  0x27   :  { %p1033_p4 = pnand %p1031_p3, %p1028_p2 }
  0x29   :  { %1036 = shalt.err (!%p1033_p4)
}
  0x2a   :  { %s1037_s19 = scalar_lea.vmem %s39_s29, 2048  ;;  %p1042_p6 = scmp.lt.s32.totalorder %s39_s29, %s39_s29 }
  0x2b   :  { %p1038_p5 = scmp.ne.s32.totalorder %s39_s29, %s1037_s19  ;;  %p1043_p7 = scmp.lt.s32.totalorder %s1037_s19, %s1037_s19 }
  0x2d   :  { %p1044_p8 = por %p1043_p7, %p1042_p6 }
  0x2f   :  { %p1045_p9 = pnand %p1044_p8, %p1038_p5 }
  0x31   :  { %1048 = shalt.err (!%p1045_p9)
}
  0x32   :  { %44 = dma.hbm_to_vmem [thread:$0]  %s1197_s2, 2048, %s39_s29, [#allocation7], %s1078_s22, %s1078_s22, %s1079_s23  }
  0x33   :  { %1071 = dma.done.wait [#allocation4], 128  }
  0x34   :  { %1072 = vsyncadd [#allocation4], 4294967168 }
  0x35   :  { %1073 = dma.done.wait [#allocation7], 2304  }
  0x36   :  { %1074 = vsyncadd [#allocation7], 4294964992  ;;  %v1082_v0 = vmov 0.0|0.0   ;;  %vm1083_vm0 = vmmov 0   ;;  %v1084_v1 = vmov 0.0   ;;  %v55_v2 = vld [vmem:[#allocation8] sm:$0xff] }
  0x37   :  { %944 = vmatprep.subr.bf16.mxu0 %v1082_v0  ;;  %947 = vmatprep.subr.bf16.mxu1 %v1082_v0  ;;  %v56_v3 = vld [vmem:[#allocation8 + $0x8] sm:$0xff]  ;;  %v133_v4 = vld [vmem:[#allocation8 + $0x10] sm:$0xff]  ;;  %v134_v6 = vld [vmem:[#allocation8 + $0x18] sm:$0xff]  ;;  %vm57_vm1 = vcmask 130048   ;;  %s1085_s2 = smov [#allocation9]  }
  0x38   :  { %876 = vmatprep.mubr.msk.f32.mxu0 %vm1083_vm0, %v1084_v1  ;;  %883 = vmatprep.mubr.msk.f32.mxu1 %vm1083_vm0, %v1084_v1  ;;  %v945_v5 = vpack.c.bf16 %v56_v3, %v55_v2  ;;  %v208_v7 = vld [vmem:[#allocation8 + $0x20] sm:$0xff]  ;;  %v948_v8 = vpack.c.bf16 %v134_v6, %v133_v4  ;;  %v209_v9 = vld [vmem:[#allocation8 + $0x28] sm:$0xff]  ;;  %v283_v10 = vld [vmem:[#allocation8 + $0x30] sm:$0xff]  ;;  %s809_s21 = sshll.u32 %s1085_s2, 4  ;;  %s810_s21 = int_to_ptr.vmem [resolvable:$true] %s809_s21 }
  0x39   :  { %v284_v11 = vld [vmem:[#allocation8 + $0x38] sm:$0xff]  ;;  %v54_v12 = vld [vmem:[#allocation3] sm:$0xff]  ;;  %v951_v13 = vpack.c.bf16 %v209_v9, %v208_v7  ;;  %v358_v15 = vld [vmem:[#allocation8 + $0x40] sm:$0xff]  ;;  %s1049_s24 = scalar_lea.vmem %s810_s21, 1024  ;;  %p1054_p11 = scmp.lt.s32.totalorder %s810_s21, %s810_s21 }
  0x3a   :  { %946 = vmatpush3.bf16.msra.mxu0 %v945_v5  ;;  %949 = vmatpush3.bf16.msra.mxu1 %v948_v8  ;;  %v954_v14 = vpack.c.bf16 %v284_v11, %v283_v10  ;;  %v359_v16 = vld [vmem:[#allocation8 + $0x48] sm:$0xff]  ;;  %v433_v17 = vld [vmem:[#allocation8 + $0x50] sm:$0xff]  ;;  %v434_v18 = vld [vmem:[#allocation8 + $0x58] sm:$0xff]  ;;  %p1050_p10 = scmp.ne.s32.totalorder %s810_s21, %s1049_s24  ;;  %p1055_p12 = scmp.lt.s32.totalorder %s1049_s24, %s1049_s24 }
  0x3b   :  { %950 = vmatprep.subr.bf16.mxu0 %v1082_v0  ;;  %953 = vmatprep.subr.bf16.mxu1 %v1082_v0  ;;  %v957_v19 = vpack.c.bf16 %v359_v16, %v358_v15  ;;  %v960_v20 = vpack.c.bf16 %v434_v18, %v433_v17  ;;  %v508_v21 = vld [vmem:[#allocation8 + $0x60] sm:$0xff]  ;;  %v509_v22 = vld [vmem:[#allocation8 + $0x68] sm:$0xff]  ;;  %v583_v23 = vld [vmem:[#allocation8 + $0x70] sm:$0xff] }
  0x3c   :  { %v584_v24 = vld [vmem:[#allocation8 + $0x78] sm:$0xff]  ;;  %v963_v25 = vpack.c.bf16 %v509_v22, %v508_v21  ;;  %v665_v27 = vld [vmem:[#allocation6] sm:$0xff]  ;;  %p1056_p13 = por %p1055_p12, %p1054_p11 }
  0x3d   :  { %877 = vmatmul.mubr.msk.f32.vlgmr.msra.gmra.mrb[0].mxu0 %vm57_vm1, %v54_v12  ;;  %884 = vmatmul.mubr.msk.f32.vlgmr.msra.gmra.mrb[0].mxu1 %vm57_vm1, %v54_v12  ;;  %v966_v26 = vpack.c.bf16 %v584_v24, %v583_v23  ;;  %v666_v28 = vld [vmem:[#allocation6 + $0x8] sm:$0xff] }
  0x3e   :  { %952 = vmatpush3.bf16.msra.mxu0 %v951_v13  ;;  %955 = vmatpush3.bf16.msra.mxu1 %v954_v14  ;;  %v968_v29 = vpack.c.bf16 %v666_v28, %v665_v27  ;;  %p1057_p0 = pnand %p1056_p13, %p1050_p10 }
  0x3f   :  { %890 = vmatprep.mubr.msk.f32.mxu0 %vm1083_vm0, %v1084_v1  ;;  %897 = vmatprep.mubr.msk.f32.mxu1 %vm1083_vm0, %v1084_v1 }
  0x40   :  { %956 = vmatprep.subr.bf16.mxu0 %v1082_v0  ;;  %959 = vmatprep.subr.bf16.mxu1 %v1082_v0 }
  0x41   :  { %891 = vmatmul.mubr.msk.f32.vlgmr.msra.gmra.mrb[2].mxu0 %vm57_vm1, %v54_v12  ;;  %898 = vmatmul.mubr.msk.f32.vlgmr.msra.gmra.mrb[2].mxu1 %vm57_vm1, %v54_v12 }
  0x42   :  { %958 = vmatpush3.bf16.msra.mxu0 %v957_v19  ;;  %961 = vmatpush3.bf16.msra.mxu1 %v960_v20 }
  0x43   :  { %904 = vmatprep.mubr.msk.f32.mxu0 %vm1083_vm0, %v1084_v1  ;;  %911 = vmatprep.mubr.msk.f32.mxu1 %vm1083_vm0, %v1084_v1 }
  0x44   :  { %962 = vmatprep.subr.bf16.mxu0 %v1082_v0  ;;  %965 = vmatprep.subr.bf16.mxu1 %v1082_v0 }
  0x45   :  { %905 = vmatmul.mubr.msk.f32.vlgmr.msra.gmra.mrb[4].mxu0 %vm57_vm1, %v54_v12  ;;  %912 = vmatmul.mubr.msk.f32.vlgmr.msra.gmra.mrb[4].mxu1 %vm57_vm1, %v54_v12 }
  0x46   :  { %964 = vmatpush3.bf16.msra.mxu0 %v963_v25  ;;  %967 = vmatpush3.bf16.msra.mxu1 %v966_v26 }
  0x47   :  { %918 = vmatprep.mubr.msk.f32.mxu0 %vm1083_vm0, %v1084_v1  ;;  %925 = vmatprep.mubr.msk.f32.mxu1 %vm1083_vm0, %v1084_v1 }
  0x48   :  { %969 = vmatprep.subr.bf16.mxu0 %v968_v29  ;;  %972 = vmatprep.subr.bf16.mxu1 %v968_v29 }
  0x49   :  { %919 = vmatmul.mubr.msk.f32.vlgmr.msra.gmra.mrb[6].mxu0 %vm57_vm1, %v54_v12  ;;  %926 = vmatmul.mubr.msk.f32.vlgmr.msra.gmra.mrb[6].mxu1 %vm57_vm1, %v54_v12 }
  0x4a   :  { %971 = vmatpush3.bf16.msra.mxu0 %v968_v29  ;;  %973 = vmatpush3.bf16.msra.mxu1 %v968_v29 }
 0x110   :  { %v127_v30 = vpop.f32.mrb[0].mxu0  ;;  %v201_v32 = vpop.f32.mrb[0].mxu1 }
 0x111   :  { %131 = vst.msk [vmem:[#allocation2] sm:$0xff] %vm57_vm1, %v127_v30  ;;  %v878_v31 = vpop.f32.mrb[1].mxu0  ;;  %206 = vst.msk [vmem:[#allocation2 + $0x8] sm:$0xff] %vm57_vm1, %v201_v32  ;;  %v885_v33 = vpop.f32.mrb[1].mxu1 }
 0x114   :  { %v276_v34 = vpop.f32.mrb[2].mxu0  ;;  %v351_v36 = vpop.f32.mrb[2].mxu1 }
 0x115   :  { %281 = vst.msk [vmem:[#allocation2 + $0x10] sm:$0xff] %vm57_vm1, %v276_v34  ;;  %v892_v35 = vpop.f32.mrb[3].mxu0  ;;  %356 = vst.msk [vmem:[#allocation2 + $0x18] sm:$0xff] %vm57_vm1, %v351_v36  ;;  %v899_v37 = vpop.f32.mrb[3].mxu1 }
 0x118   :  { %v426_v38 = vpop.f32.mrb[4].mxu0  ;;  %v657_v39 = vld [vmem:[#allocation2] sm:$0xff]  ;;  %v501_v41 = vpop.f32.mrb[4].mxu1  ;;  %v658_v42 = vld [vmem:[#allocation2 + $0x8] sm:$0xff] }
 0x119   :  { %431 = vst.msk [vmem:[#allocation2 + $0x20] sm:$0xff] %vm57_vm1, %v426_v38  ;;  %v906_v40 = vpop.f32.mrb[5].mxu0  ;;  %932 = vmatprep.mubr.msk.f32.mxu0 %vm57_vm1, %v657_v39  ;;  %506 = vst.msk [vmem:[#allocation2 + $0x28] sm:$0xff] %vm57_vm1, %v501_v41  ;;  %v913_v43 = vpop.f32.mrb[5].mxu1 }
 0x11a   :  { %933 = vmatmul.mubr.msk.f32.vlgmr.msra.gmra.mrb[8].mxu0 %vm57_vm1, %v658_v42 }
 0x11c   :  { %v576_v44 = vpop.f32.mrb[6].mxu0  ;;  %v659_v45 = vld [vmem:[#allocation2 + $0x10] sm:$0xff]  ;;  %v651_v47 = vpop.f32.mrb[6].mxu1  ;;  %v660_v48 = vld [vmem:[#allocation2 + $0x18] sm:$0xff] }
 0x11d   :  { %581 = vst.msk [vmem:[#allocation2 + $0x30] sm:$0xff] %vm57_vm1, %v576_v44  ;;  %v920_v46 = vpop.f32.mrb[7].mxu0  ;;  %935 = vmatprep.mubr.msk.f32.mxu0 %vm57_vm1, %v659_v45  ;;  %656 = vst.msk [vmem:[#allocation2 + $0x38] sm:$0xff] %vm57_vm1, %v651_v47  ;;  %v927_v49 = vpop.f32.mrb[7].mxu1 }
 0x11e   :  { %936 = vmatmul.mubr.msk.f32.gmra.mrb[10].mxu0 %vm57_vm1, %v660_v48 }
 0x120   :  { %v661_v50 = vld [vmem:[#allocation2 + $0x20] sm:$0xff]  ;;  %v662_v51 = vld [vmem:[#allocation2 + $0x28] sm:$0xff] }
 0x121   :  { %938 = vmatprep.mubr.msk.f32.mxu1 %vm57_vm1, %v661_v50 }
 0x122   :  { %939 = vmatmul.mubr.msk.f32.vlgmr.msra.gmra.mrb[8].mxu1 %vm57_vm1, %v662_v51 }
 0x124   :  { %v663_v52 = vld [vmem:[#allocation2 + $0x30] sm:$0xff]  ;;  %v664_v53 = vld [vmem:[#allocation2 + $0x38] sm:$0xff] }
 0x125   :  { %941 = vmatprep.mubr.msk.f32.mxu1 %vm57_vm1, %v663_v52 }
 0x126   :  { %942 = vmatmul.mubr.msk.f32.gmra.mrb[10].mxu1 %vm57_vm1, %v664_v53 }
 0x1ed   :  { %v934_v54 = vpop.f32.mrb[8].mxu0 }
 0x1ee   :  { %797 = vst [vmem:[#allocation9 + $0x8] sm:$0xff] %v934_v54  ;;  %v757_v55 = vpop.f32.mrb[9].mxu0 }
 0x1ef   :  { %796 = vst [vmem:[#allocation9] sm:$0xff] %v757_v55 }
 0x1f1   :  { %v937_v56 = vpop.f32.mrb[10].mxu0 }
 0x1f2   :  { %799 = vst [vmem:[#allocation9 + $0x18] sm:$0xff] %v937_v56  ;;  %v767_v57 = vpop.f32.mrb[11].mxu0 }
 0x1f3   :  { %798 = vst [vmem:[#allocation9 + $0x10] sm:$0xff] %v767_v57 }
 0x1f5   :  { %v940_v58 = vpop.f32.mrb[8].mxu1 }
 0x1f6   :  { %801 = vst [vmem:[#allocation9 + $0x28] sm:$0xff] %v940_v58  ;;  %v777_v59 = vpop.f32.mrb[9].mxu1 }
 0x1f7   :  { %800 = vst [vmem:[#allocation9 + $0x20] sm:$0xff] %v777_v59 }
 0x1f9   :  { %v943_v60 = vpop.f32.mrb[10].mxu1 }
 0x1fa   :  { %803 = vst [vmem:[#allocation9 + $0x38] sm:$0xff] %v943_v60  ;;  %v787_v61 = vpop.f32.mrb[11].mxu1 }
 0x1fb   :  { %802 = vst [vmem:[#allocation9 + $0x30] sm:$0xff] %v787_v61 }
 0x1fc   :  { %1060 = shalt.err (!%p1057_p0)
}
 0x1fd   :  { %s1061_s27 = scalar_lea.hbm %s1198_s3, 1024 }
 0x1fe   :  { %p1062_p1 = scmp.ne.s32.totalorder %s1198_s3, %s1061_s27  ;;  %p1065_p2 = scmp.lt.u32.totalorder %s1061_s27, %s1198_s3 }
 0x200   :  { %p1067_p3 = pnand %p1065_p2, %p1062_p1 }
 0x202   :  { %1070 = shalt.err (!%p1067_p3)
}
 0x203   :  { %815 = dma.vmem_to_hbm [thread:$0]  %s810_s21, 1024, %s1198_s3, [#allocation5], %s1078_s22, %s1078_s22, %s1079_s23  }
 0x204   :  { %1075 = dma.done.wait [#allocation5], 1024  }
 0x205   :  { %1076 = vsyncadd [#allocation5], 4294966272 }
 0x206   :  { %819 = vsyncpa [#allocation4], 1 }
 0x207   :  { %820 = vsyncpa [#allocation7], 1 }
 0x208   :  { %821 = vsyncpa [#allocation5], 1 }

</bundles_post_ra>
